<compile_context>
chip_gen: v7x
topology: tpu7x:2x2x1
jax: 0.10.0
libtpu: 0.0.40
codegen_flags: <defaults>
</compile_context>

<pallas_src>
import jax
import jax.numpy as jnp
from jax import lax
from jax.experimental import pallas as pl
from jax.experimental.pallas import tpu as pltpu

BN_EPS = 1e-5
_MAX_BATCH_TILE = 4096   # grid-overhead bound: big tiles; VMEM use stays KiB–MiB scale
_TB_ALIGN = 128          # batch tile is the lane axis of the (Dout, TB) output block


def _round_up(n, m):
    return ((n + m - 1) // m) * m


def _choose_tiles(B, max_tile):
    """Pick (n_tiles, TB) with TB a multiple of 128; even #tiles for v7x dual-TC."""
    n = pl.cdiv(B, max_tile)
    if B >= 2 * _TB_ALIGN:
        n = max(n, 2)            # v7x: give both TensorCores at least one tile
        if n % 2:
            n += 1               # even tile count -> balanced 2-TC split
    TB = _round_up(pl.cdiv(B, n), _TB_ALIGN)
    return n, TB


def _fused_mlp_kernel(x_ref, w1_ref, b1_ref, w2_ref, b2_ref, o_ref):
    # x arrives f32; cast to bf16 in-VMEM (VPU cast hides under DMA/MXU) so the
    # wrapper never runs a separate HBM cast+copy pass.
    x = x_ref[...].astype(jnp.bfloat16)
    # Linear1 (+ folded BatchNorm eval): (TB, Din)bf16 @ (Din, H)bf16 -> f32
    h = jnp.dot(x, w1_ref[...], preferred_element_type=jnp.float32)
    h = jnp.maximum(h + b1_ref[...], 0.0)                 # bias + ReLU in f32
    # Linear2, transposed so the 128-multiple batch tile lands on the lane axis:
    #   (Dout, H)bf16 x (TB, H)bf16 contracting H -> (Dout, TB) f32, lane-dense store.
    out = lax.dot_general(
        w2_ref[...], h.astype(jnp.bfloat16),
        dimension_numbers=(((1,), (1,)), ((), ())),
        preferred_element_type=jnp.float32)
    o_ref[...] = (out + b2_ref[...]).astype(o_ref.dtype)


def functional_forward(params, buffers, x, *,
                       max_batch_tile=_MAX_BATCH_TILE,
                       out_dtype=jnp.float32,
                       transposed_output=False):
    """Pure-functional forward: analogue of FunctionalModuleWithBuffers.forward.

    params  : (w1, b1, gamma, beta, w2, b2)  in PyTorch shapes/layout
    buffers : (running_mean, running_var)
    x       : (B, in_features)
    Returns (B, out_features) in `out_dtype`, or (out_features, B) if
    transposed_output=True (kernel-native layout, no extra copy).
    """
    w1, b1, gamma, beta, w2, b2 = params
    running_mean, running_var = buffers

    B, Din = x.shape
    H = w1.shape[0]
    Dout = w2.shape[0]

    # ---- one-time O(Din*H) glue: fold BN(eval) into Linear1, transpose the
    #      PyTorch (out,in) W1 to row-major, cast weights to bf16 (biases f32).
    scale = gamma * lax.rsqrt(running_var + BN_EPS)               # (H,)
    w1_eff = (w1 * scale[:, None]).T.astype(jnp.bfloat16)         # (Din, H)
    b1_eff = ((b1 - running_mean) * scale + beta
              ).astype(jnp.float32).reshape(1, H)
    w2_bf = w2.astype(jnp.bfloat16)                               # (Dout, H) PyTorch layout
    b2r = b2.astype(jnp.float32).reshape(Dout, 1)

    n_tiles, TB = _choose_tiles(B, max_batch_tile)
    Bp = n_tiles * TB

    # x stays f32 (4 B/elem HBM read, cast in-kernel). Pad only when needed.
    x_p = x if Bp == B else jnp.pad(x, ((0, Bp - B), (0, 0)))

    cost = pl.CostEstimate(
        flops=2 * Bp * (Din * H + H * Dout),
        transcendentals=0,
        bytes_accessed=(x_p.size * x_p.dtype.itemsize
                        + Dout * Bp * jnp.dtype(out_dtype).itemsize
                        + (w1_eff.size + w2_bf.size) * 2 + (H + Dout) * 4),
    )

    out_t = pl.pallas_call(
        _fused_mlp_kernel,
        out_shape=jax.ShapeDtypeStruct((Dout, Bp), out_dtype),
        grid=(n_tiles,),
        in_specs=[
            pl.BlockSpec((TB, Din), lambda i: (i, 0)),    # x: batch-tiled
            pl.BlockSpec((Din, H), lambda i: (0, 0)),     # w1_eff: VMEM-resident
            pl.BlockSpec((1, H), lambda i: (0, 0)),       # b1_eff
            pl.BlockSpec((Dout, H), lambda i: (0, 0)),    # w2 (bf16, PyTorch layout)
            pl.BlockSpec((Dout, 1), lambda i: (0, 0)),    # b2
        ],
        out_specs=pl.BlockSpec((Dout, TB), lambda i: (0, i)),   # lane-dense store
        compiler_params=pltpu.CompilerParams(
            dimension_semantics=("parallel",)),           # v7x: shard over 2 TCs
        cost_estimate=cost,
    )(x_p, w1_eff, b1_eff, w2_bf, b2r)

    out_t = out_t[:, :B] if Bp != B else out_t
    if transposed_output:
        return out_t                 # (Dout, B): kernel-native, zero extra copies
    return out_t.T                   # (B, Dout): PyTorch layout (tiny wrapper transpose)


def _init_state(key, din=32, hidden=64, dout=16):
    """Deterministic parameter / buffer construction (synthetic, no checkpoint)."""
    k1, k2 = jax.random.split(key, 2)
    w1 = jax.random.normal(k1, (hidden, din), jnp.float32) * (1.0 / jnp.sqrt(din))
    b1 = jnp.full((hidden,), 0.01, jnp.float32)
    gamma = jnp.ones((hidden,), jnp.float32)
    beta = jnp.zeros((hidden,), jnp.float32)
    w2 = jax.random.normal(k2, (dout, hidden), jnp.float32) * (1.0 / jnp.sqrt(hidden))
    b2 = jnp.full((dout,), -0.02, jnp.float32)
    params = (w1, b1, gamma, beta, w2, b2)

    running_mean = 0.05 * jnp.arange(hidden, dtype=jnp.float32) / hidden
    running_var = jnp.ones((hidden,), jnp.float32) * 1.5
    buffers = (running_mean, running_var)
    return params, buffers


def _reference_forward_f32(params, buffers, x):
    """Plain f32 JAX reference of the stateless model (semantic check)."""
    w1, b1, gamma, beta, w2, b2 = params
    mean, var = buffers
    h = x @ w1.T + b1
    h = (h - mean) * (gamma / jnp.sqrt(var + BN_EPS)) + beta
    h = jnp.maximum(h, 0.0)
    return h @ w2.T + b2


def _reference_forward_bf16(params, buffers, x):
    """Reference with the same BN fold + bf16 casts as the kernel (tight check)."""
    w1, b1, gamma, beta, w2, b2 = params
    mean, var = buffers
    scale = gamma * lax.rsqrt(var + BN_EPS)
    w1_eff = (w1 * scale[:, None]).T.astype(jnp.bfloat16)
    b1_eff = (b1 - mean) * scale + beta
    h = jnp.dot(x.astype(jnp.bfloat16), w1_eff,
                preferred_element_type=jnp.float32) + b1_eff
    h = jnp.maximum(h, 0.0)
    return jnp.dot(h.astype(jnp.bfloat16), w2.T.astype(jnp.bfloat16),
                   preferred_element_type=jnp.float32) + b2


if __name__ == "__main__":
    key = jax.random.PRNGKey(0)
    kx, kp, kx2 = jax.random.split(key, 3)

    B, DIN, HID, DOUT = 8, 32, 64, 16
    x = jax.random.normal(kx, (B, DIN), jnp.float32)
    params, buffers = _init_state(kp, din=DIN, hidden=HID, dout=DOUT)

    out = jax.block_until_ready(functional_forward(params, buffers, x))
    assert out.shape == (B, DOUT)
    assert out.dtype == jnp.float32

    ref_tight = _reference_forward_bf16(params, buffers, x)
    ref_f32 = _reference_forward_f32(params, buffers, x)
    assert jnp.allclose(out, ref_tight, atol=1e-3, rtol=1e-3), "mismatch vs bf16 ref"
    assert jnp.allclose(out, ref_f32, atol=5e-2, rtol=5e-2), "mismatch vs f32 ref"

    # Second shape exercises the multi-tile grid (even #tiles) + batch padding
    # + the lane-dense (Dout, TB) store across several grid steps.
    B2 = 300
    x2 = jax.random.normal(kx2, (B2, DIN), jnp.float32)
    out2 = jax.block_until_ready(
        functional_forward(params, buffers, x2, max_batch_tile=128))
    assert out2.shape == (B2, DOUT)
    assert jnp.allclose(out2, _reference_forward_bf16(params, buffers, x2),
                        atol=1e-3, rtol=1e-3), "mismatch (multi-tile)"

    # Kernel-native transposed layout path.
    out2_t = jax.block_until_ready(
        functional_forward(params, buffers, x2, max_batch_tile=128,
                           transposed_output=True))
    assert out2_t.shape == (DOUT, B2)
    assert jnp.allclose(out2_t.T, out2, atol=0, rtol=0), "transposed layout mismatch"

    print("KERNEL_OK")
</pallas_src>

<mosaic_0001>
module attributes {stable_mosaic.version = 11 : i64} {
  func.func @_fused_mlp_kernel(%arg0: i32, %arg1: memref<128x32xf32, #tpu.memory_space<vmem>>, %arg2: memref<32x64xbf16, #tpu.memory_space<vmem>>, %arg3: memref<1x64xf32, #tpu.memory_space<vmem>>, %arg4: memref<16x64xbf16, #tpu.memory_space<vmem>>, %arg5: memref<16x1xf32, #tpu.memory_space<vmem>>, %arg6: memref<16x128xf32, #tpu.memory_space<vmem>>) attributes {dimension_semantics = [#tpu.dimension_semantics<parallel>], iteration_bounds = array<i64: 1>, scalar_prefetch = 0 : i64, scratch_operands = 0 : i64, tpu.core_type = #tpu.core_type<tc>, window_params = [{transform_indices = @transform_0, window_bounds = array<i64: 128, 32>}, {pipeline_mode = #tpu.pipeline_mode<synchronous>, transform_indices = @transform_1, window_bounds = array<i64: 32, 64>}, {pipeline_mode = #tpu.pipeline_mode<synchronous>, transform_indices = @transform_2, window_bounds = array<i64: 1, 64>}, {pipeline_mode = #tpu.pipeline_mode<synchronous>, transform_indices = @transform_3, window_bounds = array<i64: 16, 64>}, {pipeline_mode = #tpu.pipeline_mode<synchronous>, transform_indices = @transform_4, window_bounds = array<i64: 16, 1>}, {transform_indices = @transform_5, window_bounds = array<i64: 16, 128>}]} {
    %c0 = arith.constant 0 : index
    %c0_0 = arith.constant 0 : index
    %0 = vector.load %arg1[%c0, %c0_0] : memref<128x32xf32, #tpu.memory_space<vmem>>, vector<128x32xf32>
    %1 = arith.truncf %0 : vector<128x32xf32> to vector<128x32xbf16>
    %c0_1 = arith.constant 0 : index
    %c0_2 = arith.constant 0 : index
    %2 = vector.load %arg2[%c0_1, %c0_2] : memref<32x64xbf16, #tpu.memory_space<vmem>>, vector<32x64xbf16>
    %cst = arith.constant dense<0.000000e+00> : vector<128x64xf32>
    %3 = tpu.matmul %1, %2, %cst {dimension_numbers = #tpu.dot_dimension_numbers<[1], [0], [0], [1], [0, 0, 1, 1], [], []>} : vector<128x32xbf16>, vector<32x64xbf16>, vector<128x64xf32> -> vector<128x64xf32>
    %c0_3 = arith.constant 0 : index
    %c0_4 = arith.constant 0 : index
    %4 = vector.load %arg3[%c0_3, %c0_4] : memref<1x64xf32, #tpu.memory_space<vmem>>, vector<1x64xf32>
    %5 = vector.broadcast %4 : vector<1x64xf32> to vector<128x64xf32>
    %6 = arith.addf %3, %5 : vector<128x64xf32>
    %cst_5 = arith.constant 0.000000e+00 : f32
    %7 = vector.broadcast %cst_5 : f32 to vector<128x64xf32>
    %8 = arith.maximumf %6, %7 : vector<128x64xf32>
    %c0_6 = arith.constant 0 : index
    %c0_7 = arith.constant 0 : index
    %9 = vector.load %arg4[%c0_6, %c0_7] : memref<16x64xbf16, #tpu.memory_space<vmem>>, vector<16x64xbf16>
    %10 = arith.truncf %8 : vector<128x64xf32> to vector<128x64xbf16>
    %cst_8 = arith.constant dense<0.000000e+00> : vector<16x128xf32>
    %11 = tpu.matmul %9, %10, %cst_8 {dimension_numbers = #tpu.dot_dimension_numbers<[1], [1], [0], [0], [0, 0, 1, 0], [], []>} : vector<16x64xbf16>, vector<128x64xbf16>, vector<16x128xf32> -> vector<16x128xf32>
    %c0_9 = arith.constant 0 : index
    %c0_10 = arith.constant 0 : index
    %12 = vector.load %arg5[%c0_9, %c0_10] : memref<16x1xf32, #tpu.memory_space<vmem>>, vector<16x1xf32>
    %13 = vector.broadcast %12 : vector<16x1xf32> to vector<16x128xf32>
    %14 = arith.addf %11, %13 : vector<16x128xf32>
    %c0_11 = arith.constant 0 : index
    %c0_12 = arith.constant 0 : index
    %15 = vector.load %arg6[%c0_11, %c0_12] : memref<16x128xf32, #tpu.memory_space<vmem>>, vector<16x128xf32>
    tpu.vector_store %arg6[%c0_11, %c0_12], %14 {strides = array<i32>} : memref<16x128xf32, #tpu.memory_space<vmem>>, vector<16x128xf32>,
    return
  }
  func.func @transform_0(%arg0: i32) -> (i32, i32) {
    %c0_i32 = arith.constant 0 : i32
    %c0_i32_0 = arith.constant 0 : i32
    return %arg0, %c0_i32 : i32, i32
  }
  func.func @transform_1(%arg0: i32) -> (i32, i32) {
    %c0_i32 = arith.constant 0 : i32
    %c0_i32_0 = arith.constant 0 : i32
    %c0_i32_1 = arith.constant 0 : i32
    return %c0_i32, %c0_i32_0 : i32, i32
  }
  func.func @transform_2(%arg0: i32) -> (i32, i32) {
    %c0_i32 = arith.constant 0 : i32
    %c0_i32_0 = arith.constant 0 : i32
    %c0_i32_1 = arith.constant 0 : i32
    return %c0_i32, %c0_i32_0 : i32, i32
  }
  func.func @transform_3(%arg0: i32) -> (i32, i32) {
    %c0_i32 = arith.constant 0 : i32
    %c0_i32_0 = arith.constant 0 : i32
    %c0_i32_1 = arith.constant 0 : i32
    return %c0_i32, %c0_i32_0 : i32, i32
  }
  func.func @transform_4(%arg0: i32) -> (i32, i32) {
    %c0_i32 = arith.constant 0 : i32
    %c0_i32_0 = arith.constant 0 : i32
    %c0_i32_1 = arith.constant 0 : i32
    return %c0_i32, %c0_i32_0 : i32, i32
  }
  func.func @transform_5(%arg0: i32) -> (i32, i32) {
    %c0_i32 = arith.constant 0 : i32
    %c0_i32_0 = arith.constant 0 : i32
    return %c0_i32, %arg0 : i32, i32
  }
}

</mosaic_0001>

<bundles_post_ra>
// kernel: tpu_custom_call.1
= control target key start
LH: loop header
LB: loop body
LE: loop exit
PB: predicated region body
PF: predicated region fallthrough
CT: control target
= control target key end

     0   :  { %vm69_vm0 = vcmask 261120   ;;  %s567_s0 = inlined_call_operand.vmem [shape: f32[128,32], index: 0, kind: input, shape index: {}]   ;;  %s568_s1 = inlined_call_operand.vmem [shape: bf16[32,64], index: 1, kind: input, shape index: {}]   ;;  %s569_s2 = inlined_call_operand.vmem [shape: f32[1,64], index: 2, kind: input, shape index: {}]   ;;  %s570_s3 = inlined_call_operand.vmem [shape: bf16[16,64], index: 3, kind: input, shape index: {}]   ;;  %s571_s4 = inlined_call_operand.vmem [shape: f32[16,1], index: 4, kind: input, shape index: {}]   ;;  %s572_s5 = inlined_call_operand.hbm [shape: f32[16,128], index: 5, kind: output, shape index: {}]  }
   0x1   :  { %v400_v0 = vld [vmem:[%s568_s1] sm:$0xff]   ;;  %v401_v1 = vld [vmem:[%s568_s1 + $0x8] sm:$0xff]   ;;  %v24_v5 = vld [vmem:[%s567_s0 + $0x10] sm:$0xff] }
   0x2   :  { %353 = vmatprep.subr.bf16.mxu0 %v400_v0  ;;  %v22_v2 = vld [vmem:[%s567_s0] sm:$0xff]  ;;  %v23_v3 = vld [vmem:[%s567_s0 + $0x8] sm:$0xff]  ;;  %v25_v6 = vld [vmem:[%s567_s0 + $0x18] sm:$0xff] }
   0x3   :  { %354 = vmatpush3.bf16.msra.mxu0 %v400_v0  ;;  %v38_v4 = vpack.c.bf16 %v23_v3, %v22_v2  ;;  %v26_v7 = vld [vmem:[%s567_s0 + $0x20] sm:$0xff]  ;;  %v27_v8 = vld [vmem:[%s567_s0 + $0x28] sm:$0xff]  ;;  %v39_v9 = vpack.c.bf16 %v25_v6, %v24_v5 }
   0x4   :  { %355 = vmatprep.subr.bf16.mxu0 %v401_v1  ;;  %v40_v10 = vpack.c.bf16 %v27_v8, %v26_v7 }
   0x5   :  { %357 = vmatprep.mubr.msk.bf16.mxu0 %vm69_vm0, %v38_v4 }
   0x7   :  { %356 = vmatpush3.bf16.msra.mxu0 %v401_v1 }
   0x8   :  { %10 = vsyncpa [#allocation3], 0  ;;  %v28_v11 = vld [vmem:[%s567_s0 + $0x30] sm:$0xff]  ;;  %v29_v12 = vld [vmem:[%s567_s0 + $0x38] sm:$0xff]  ;;  %v427_v26 = vmov 0.0   ;;  %vm428_vm1 = vmmov 0  }
   0x9   :  { %v30_v13 = vld [vmem:[%s567_s0 + $0x40] sm:$0xff]  ;;  %v31_v14 = vld [vmem:[%s567_s0 + $0x48] sm:$0xff]  ;;  %v41_v15 = vpack.c.bf16 %v29_v12, %v28_v11  ;;  %v32_v17 = vld [vmem:[%s567_s0 + $0x50] sm:$0xff]  ;;  %373 = vmatprep.subr.bf16.mxu1 %v427_v26  ;;  %389 = vmatprep.mubr.msk.bf16.mxu1 %vm428_vm1, %v427_v26  ;;  %v429_v28 = vmov 0   ;;  %vm234_vm2 = vcmask 523264   ;;  %s430_s7 = smov [#allocation2]  }
   0xa   :  { %358 = vmatmul.mubr.msk.bf16.vlgmr.msra.gmra.mrb[0].mxu0 %vm69_vm0, %v39_v9  ;;  %v42_v16 = vpack.c.bf16 %v31_v14, %v30_v13  ;;  %v33_v18 = vld [vmem:[%s567_s0 + $0x58] sm:$0xff]  ;;  %v34_v19 = vld [vmem:[%s567_s0 + $0x60] sm:$0xff]  ;;  %v35_v20 = vld [vmem:[%s567_s0 + $0x68] sm:$0xff]  ;;  %399 = vset.pattern.permute.xlu0 %v429_v28  ;;  %s310_s8 = sshll.u32 %s430_s7, 4  ;;  %s311_s8 = int_to_ptr.vmem [resolvable:$true] %s310_s8 }
   0xb   :  { %361 = vmatprep.mubr.msk.bf16.mxu0 %vm69_vm0, %v40_v10  ;;  %v43_v21 = vpack.c.bf16 %v33_v18, %v32_v17  ;;  %v44_v22 = vpack.c.bf16 %v35_v20, %v34_v19  ;;  %v36_v23 = vld [vmem:[%s567_s0 + $0x70] sm:$0xff]  ;;  %v37_v24 = vld [vmem:[%s567_s0 + $0x78] sm:$0xff]  ;;  %v217_v27 = vld [vmem:[%s571_s4] sm:$0xff]  ;;  %s403_s9 = scalar_lea.vmem %s311_s8, 256  ;;  %p408_p1 = scmp.lt.s32.totalorder %s311_s8, %s311_s8 }
   0xc   :  { %v45_v25 = vpack.c.bf16 %v37_v24, %v36_v23  ;;  %221 = vperm.xlu0 %399, %v217_v27   ;;  %v218_v29 = vld [vmem:[%s571_s4 + $0x8] sm:$0xff]  ;;  %v321_v30 = vld [vmem:[%s569_s2] ss:$0 sm:$0xff]  ;;  %p404_p0 = scmp.ne.s32.totalorder %s311_s8, %s403_s9  ;;  %p409_p2 = scmp.lt.s32.totalorder %s403_s9, %s403_s9 }
   0xe   :  { %p410_p3 = por %p409_p2, %p408_p1 }
  0x10   :  { %226 = vperm.xlu0 %399, %v218_v29   ;;  %p411_p4 = pnand %p410_p3, %p404_p0 }
  0x12   :  { %362 = vmatmul.mubr.msk.bf16.gmra.mrb[4].mxu0 %vm69_vm0, %v41_v15 }
  0x13   :  { %365 = vmatprep.mubr.msk.bf16.mxu0 %vm69_vm0, %v42_v16 }
  0x1a   :  { %366 = vmatmul.mubr.msk.bf16.gmra.mrb[8].mxu0 %vm69_vm0, %v43_v21 }
  0x1b   :  { %369 = vmatprep.mubr.msk.bf16.mxu0 %vm69_vm0, %v44_v22 }
  0x22   :  { %370 = vmatmul.mubr.msk.bf16.gmra.mrb[12].mxu0 %vm69_vm0, %v45_v25 }
  0xdd   :  { %v359_v31 = vpop.f32.mrb[0].mxu0 }
  0xde   :  { %v137_v32 = vadd.f32 %v359_v31, %v321_v30  ;;  %v128_v33 = vpop.f32.mrb[1].mxu0 }
  0xdf   :  { %v129_v34 = vadd.f32 %v321_v30, %v128_v33  ;;  %v360_v35 = vpop.f32.mrb[2].mxu0  ;;  %v222_v33 = vpop.permute.xlu0 %221 }
  0xe0   :  { %v140_v36 = vadd.f32 %v360_v35, %v321_v30  ;;  %v131_v37 = vpop.f32.mrb[3].mxu0  ;;  %v193_v39 = vmax.f32 %v137_v32, 0.0  ;;  %v402_v32 = vld [vmem:[%s570_s3] sm:$0xff]  }
  0xe1   :  { %v132_v38 = vadd.f32 %v321_v30, %v131_v37  ;;  %v191_v41 = vmax.f32 %v129_v34, 0.0 }
  0xe2   :  { %v194_v40 = vmax.f32 %v140_v36, 0.0 }
  0xe3   :  { %v192_v42 = vmax.f32 %v132_v38, 0.0  ;;  %v227_v37 = vpop.permute.xlu0 %226 }
  0xe4   :  { %v210_v43 = vpack.c.bf16 %v194_v40, %v193_v39 }
  0xe5   :  { %v209_v44 = vpack.c.bf16 %v192_v42, %v191_v41  ;;  %v363_v45 = vpop.f32.mrb[4].mxu0 }
  0xe6   :  { %v153_v46 = vadd.f32 %v363_v45, %v321_v30  ;;  %v144_v47 = vpop.f32.mrb[5].mxu0  ;;  %v242_v63 = vsel %vm234_vm2, %v210_v43, 0 }
  0xe7   :  { %v239_v48 = vsel %vm234_vm2, %v209_v44, 0  ;;  %v145_v49 = vadd.f32 %v321_v30, %v144_v47  ;;  %v364_v50 = vpop.f32.mrb[6].mxu0 }
  0xe8   :  { %374 = vmatpush3.bf16.xpose.msra.mxu1 %v239_v48  ;;  %v197_v51 = vmax.f32 %v153_v46, 0.0  ;;  %v156_v52 = vadd.f32 %v364_v50, %v321_v30  ;;  %v147_v53 = vpop.f32.mrb[7].mxu0 }
  0xe9   :  { %v195_v54 = vmax.f32 %v145_v49, 0.0  ;;  %v148_v55 = vadd.f32 %v321_v30, %v147_v53  ;;  %375 = vmatprep.subr.bf16.mxu1 %v427_v26 }
  0xea   :  { %v198_v56 = vmax.f32 %v156_v52, 0.0 }
  0xeb   :  { %v196_v57 = vmax.f32 %v148_v55, 0.0 }
  0xec   :  { %v212_v58 = vpack.c.bf16 %v198_v56, %v197_v51 }
  0xed   :  { %v211_v59 = vpack.c.bf16 %v196_v57, %v195_v54  ;;  %v367_v60 = vpop.f32.mrb[8].mxu0 }
  0xee   :  { %v169_v61 = vadd.f32 %v367_v60, %v321_v30  ;;  %v160_v62 = vpop.f32.mrb[9].mxu0  ;;  %v248_v27 = vsel %vm234_vm2, %v212_v58, 0 }
  0xef   :  { %v161_v0 = vadd.f32 %v321_v30, %v160_v62  ;;  %v368_v1 = vpop.f32.mrb[10].mxu0  ;;  %v245_v14 = vsel %vm234_vm2, %v211_v59, 0 }
  0xf0   :  { %376 = vmatpush3.bf16.xpose.msra.mxu1 %v242_v63  ;;  %v201_v2 = vmax.f32 %v169_v61, 0.0  ;;  %v172_v3 = vadd.f32 %v368_v1, %v321_v30  ;;  %v163_v4 = vpop.f32.mrb[11].mxu0 }
  0xf1   :  { %377 = vmatprep.subr.bf16.mxu1 %v427_v26  ;;  %v199_v5 = vmax.f32 %v161_v0, 0.0  ;;  %v164_v6 = vadd.f32 %v321_v30, %v163_v4 }
  0xf2   :  { %v202_v7 = vmax.f32 %v172_v3, 0.0 }
  0xf3   :  { %v200_v8 = vmax.f32 %v164_v6, 0.0 }
  0xf4   :  { %v214_v9 = vpack.c.bf16 %v202_v7, %v201_v2 }
  0xf5   :  { %v213_v10 = vpack.c.bf16 %v200_v8, %v199_v5  ;;  %v371_v11 = vpop.f32.mrb[12].mxu0 }
  0xf6   :  { %v185_v12 = vadd.f32 %v371_v11, %v321_v30  ;;  %v176_v13 = vpop.f32.mrb[13].mxu0  ;;  %v254_v29 = vsel %vm234_vm2, %v214_v9, 0 }
  0xf7   :  { %v177_v15 = vadd.f32 %v321_v30, %v176_v13  ;;  %v372_v16 = vpop.f32.mrb[14].mxu0  ;;  %v251_v28 = vsel %vm234_vm2, %v213_v10, 0 }
  0xf8   :  { %378 = vmatpush3.bf16.xpose.msra.mxu1 %v245_v14  ;;  %v205_v17 = vmax.f32 %v185_v12, 0.0  ;;  %v188_v18 = vadd.f32 %v372_v16, %v321_v30  ;;  %v179_v19 = vpop.f32.mrb[15].mxu0 }
  0xf9   :  { %379 = vmatprep.subr.bf16.mxu1 %v427_v26  ;;  %v203_v20 = vmax.f32 %v177_v15, 0.0  ;;  %v180_v21 = vadd.f32 %v321_v30, %v179_v19 }
  0xfa   :  { %v206_v22 = vmax.f32 %v188_v18, 0.0 }
  0xfb   :  { %v204_v23 = vmax.f32 %v180_v21, 0.0 }
  0xfc   :  { %v216_v24 = vpack.c.bf16 %v206_v22, %v205_v17 }
  0xfd   :  { %v215_v25 = vpack.c.bf16 %v204_v23, %v203_v20 }
  0xfe   :  { %v260_v31 = vsel %vm234_vm2, %v216_v24, 0 }
  0xff   :  { %v257_v30 = vsel %vm234_vm2, %v215_v25, 0 }
 0x100   :  { %380 = vmatpush3.bf16.xpose.msra.mxu1 %v248_v27 }
 0x101   :  { %381 = vmatprep.subr.bf16.mxu1 %v427_v26 }
 0x108   :  { %382 = vmatpush3.bf16.xpose.msra.mxu1 %v251_v28 }
 0x109   :  { %383 = vmatprep.subr.bf16.mxu1 %v427_v26 }
 0x110   :  { %384 = vmatpush3.bf16.xpose.msra.mxu1 %v254_v29 }
 0x111   :  { %385 = vmatprep.subr.bf16.mxu1 %v427_v26 }
 0x118   :  { %386 = vmatpush3.bf16.xpose.msra.mxu1 %v257_v30 }
 0x119   :  { %387 = vmatprep.subr.bf16.mxu1 %v427_v26 }
 0x120   :  { %388 = vmatpush3.bf16.xpose.msra.mxu1 %v260_v31 }
 0x127   :  { %390 = vmatmul.mubr.msk.bf16.vlgmr.msra.gmra.mrb[0].mxu1 %vm234_vm2, %v402_v32 }
 0x1fa   :  { %v296_v34 = vpop.f32.mrb[0].mxu1 }
 0x1fb   :  { %v297_v35 = vadd.f32 %v296_v34, %v222_v33  ;;  %v391_v36 = vpop.f32.mrb[1].mxu1 }
 0x1fc   :  { %v299_v38 = vpop.f32.mrb[2].mxu1 }
 0x1fd   :  { %303 = vst [vmem:[#allocation2] sm:$0xff] %v297_v35  ;;  %v300_v26 = vadd.f32 %v299_v38, %v227_v37  ;;  %v392_v39 = vpop.f32.mrb[3].mxu1 }
 0x1ff   :  { %304 = vst [vmem:[#allocation2 + $0x8] sm:$0xff] %v300_v26 }
 0x200   :  { %414 = shalt.err (!%p411_p4)
}
 0x201   :  { %s415_s11 = scalar_lea.hbm %s572_s5, 256 }
 0x202   :  { %p416_p5 = scmp.ne.s32.totalorder %s572_s5, %s415_s11  ;;  %p419_p6 = scmp.lt.u32.totalorder %s415_s11, %s572_s5 }
 0x204   :  { %p421_p7 = pnand %p419_p6, %p416_p5 }
 0x206   :  { %424 = shalt.err (!%p421_p7)
}
 0x207   :  { %s431_s16 = smov 128   ;;  %s432_s17 = smov 8  }
 0x208   :  { %316 = dma.vmem_to_hbm [thread:$0]  %s311_s8, 256, %s572_s5, [#allocation3], %s431_s16, %s431_s16, %s432_s17  }
 0x209   :  { %425 = dma.done.wait [#allocation3], 256  }
 0x20a   :  { %426 = vsyncadd [#allocation3], 4294967040 }
 0x20b   :  { %320 = vsyncpa [#allocation3], 1 }

</bundles_post_ra>
